<compile_context>
chip_gen: v7x
topology: tpu7x:2x2x1
jax: 0.10.0
libtpu: 0.0.40
codegen_flags: <defaults>
</compile_context>

<pallas_src>
import jax
import jax.numpy as jnp
from jax.experimental import pallas as pl
from jax.experimental.pallas import tpu as pltpu


def _leaky_relu(x, slope=0.1):
    return jnp.where(x > 0, x, slope * x)


def gr_block_kernel(xT_ref, ws1_ref, bs1_ref, wd1_ref,
                    ws2_ref, bs2_ref, wd2_ref,
                    wout_ref, bout_ref, o_ref):
    xT = xT_ref[...]                                   # (D, TB), lane-dense batch

    # Step 1: Ws1 -> LeakyReLU -> Wd1
    h1 = jnp.dot(ws1_ref[...], xT, preferred_element_type=jnp.float32) + bs1_ref[...]
    o1 = jnp.dot(wd1_ref[...], _leaky_relu(h1), preferred_element_type=jnp.float32)

    # Step 2: Ws2 -> LeakyReLU -> Wd2
    h2 = jnp.dot(ws2_ref[...], o1, preferred_element_type=jnp.float32) + bs2_ref[...]
    o2 = jnp.dot(wd2_ref[...], _leaky_relu(h2), preferred_element_type=jnp.float32)

    # Final projection to a single output row (1, TB); scalar bias from SMEM.
    pred = jnp.dot(wout_ref[...], o2, preferred_element_type=jnp.float32) + bout_ref[0, 0]
    o_ref[...] = pred.astype(o_ref.dtype)


def _round_up(x, m):
    return ((x + m - 1) // m) * m


def geometric_realization_block(x, params, *, block_b=8192):
    """x: (batch, input_dim) float32.

    params (PyTorch nn.Linear layout):
      ws1/ws2: (H, D)   bs1/bs2: (H, 1)
      wd1/wd2: (D, H)
      wout:    (1, D)   bout:    (1, 1)
    Returns (batch, 1).
    """
    B, D = x.shape
    H = params["ws1"].shape[0]
    assert params["ws1"].shape == (H, D)
    assert params["wd1"].shape == (D, H)
    assert params["wout"].shape == (1, D)

    # Batch tile: multiple of 128 on the lane axis; pad batch to a whole tile.
    TB = min(_round_up(block_b, 128), _round_up(B, 128))
    Bp = _round_up(B, TB)

    # Layout plumbing in the wrapper: pad + transpose so batch is the lane axis.
    xT = jnp.pad(x, ((0, Bp - B), (0, 0))).T            # (D, Bp)

    const = lambda shape: pl.BlockSpec(shape, lambda i: (0, 0))  # weights stay resident

    outT = pl.pallas_call(
        gr_block_kernel,
        out_shape=jax.ShapeDtypeStruct((1, Bp), x.dtype),
        grid=(Bp // TB,),
        in_specs=[
            pl.BlockSpec((D, TB), lambda i: (0, i)),             # x^T (streamed)
            const((H, D)),                                       # Ws1
            const((H, 1)),                                       # bs1
            const((D, H)),                                       # Wd1
            const((H, D)),                                       # Ws2
            const((H, 1)),                                       # bs2
            const((D, H)),                                       # Wd2
            const((1, D)),                                       # Wout
            pl.BlockSpec(memory_space=pltpu.MemorySpace.SMEM),   # bout scalar
        ],
        out_specs=pl.BlockSpec((1, TB), lambda i: (0, i)),
        compiler_params=pltpu.CompilerParams(
            dimension_semantics=("parallel",),
        ),
    )(xT, params["ws1"], params["bs1"], params["wd1"],
      params["ws2"], params["bs2"], params["wd2"],
      params["wout"], params["bout"])

    return outT[0, :B].reshape(B, 1)


def init_params(key, input_dim, hidden_dim=16):
    """Deterministic synthetic init (uniform, roughly matching nn.Linear scale)."""
    ks = jax.random.split(key, 8)

    def uni(k, shape, fan_in):
        bound = 1.0 / jnp.sqrt(fan_in)
        return jax.random.uniform(k, shape, jnp.float32, -bound, bound)

    D, H = input_dim, hidden_dim
    return {
        "ws1":  uni(ks[0], (H, D), D),
        "bs1":  uni(ks[1], (H, 1), D),
        "wd1":  uni(ks[2], (D, H), H),
        "ws2":  uni(ks[3], (H, D), D),
        "bs2":  uni(ks[4], (H, 1), D),
        "wd2":  uni(ks[5], (D, H), H),
        "wout": uni(ks[6], (1, D), D),
        "bout": uni(ks[7], (1, 1), D),
    }


def reference_forward(x, p):
    h1 = x @ p["ws1"].T + p["bs1"].T
    o1 = jnp.where(h1 > 0, h1, 0.1 * h1) @ p["wd1"].T
    h2 = o1 @ p["ws2"].T + p["bs2"].T
    o2 = jnp.where(h2 > 0, h2, 0.1 * h2) @ p["wd2"].T
    return o2 @ p["wout"].T + p["bout"].T


if __name__ == "__main__":
    key = jax.random.PRNGKey(0)
    kx, kp, kx2 = jax.random.split(key, 3)

    batch, input_dim, hidden_dim = 2, 8, 16
    x = jax.random.normal(kx, (batch, input_dim), jnp.float32)
    params = init_params(kp, input_dim, hidden_dim)

    out = jax.block_until_ready(geometric_realization_block(x, params))
    ref = reference_forward(x, params)
    assert out.shape == (batch, 1)
    assert jnp.allclose(out, ref, atol=1e-4, rtol=1e-5)

    # Exercise the multi-tile grid path (3 batch tiles of 128 + tail padding).
    x2 = jax.random.normal(kx2, (260, input_dim), jnp.float32)
    out2 = jax.block_until_ready(
        geometric_realization_block(x2, params, block_b=128))
    ref2 = reference_forward(x2, params)
    assert out2.shape == (260, 1)
    assert jnp.allclose(out2, ref2, atol=1e-4, rtol=1e-5)

    print("KERNEL_OK")
</pallas_src>

<mosaic_0001>
module attributes {stable_mosaic.version = 11 : i64} {
  func.func @gr_block_kernel(%arg0: i32, %arg1: memref<8x128xf32, #tpu.memory_space<vmem>>, %arg2: memref<16x8xf32, #tpu.memory_space<vmem>>, %arg3: memref<16x1xf32, #tpu.memory_space<vmem>>, %arg4: memref<8x16xf32, #tpu.memory_space<vmem>>, %arg5: memref<16x8xf32, #tpu.memory_space<vmem>>, %arg6: memref<16x1xf32, #tpu.memory_space<vmem>>, %arg7: memref<8x16xf32, #tpu.memory_space<vmem>>, %arg8: memref<1x8xf32, #tpu.memory_space<vmem>>, %arg9: memref<1x1xf32, #tpu.memory_space<smem>>, %arg10: memref<1x128xf32, #tpu.memory_space<vmem>>) attributes {dimension_semantics = [#tpu.dimension_semantics<parallel>], iteration_bounds = array<i64: 1>, scalar_prefetch = 0 : i64, scratch_operands = 0 : i64, tpu.core_type = #tpu.core_type<tc>, window_params = [{transform_indices = @transform_0, window_bounds = array<i64: 8, 128>}, {pipeline_mode = #tpu.pipeline_mode<synchronous>, transform_indices = @transform_1, window_bounds = array<i64: 16, 8>}, {pipeline_mode = #tpu.pipeline_mode<synchronous>, transform_indices = @transform_2, window_bounds = array<i64: 16, 1>}, {pipeline_mode = #tpu.pipeline_mode<synchronous>, transform_indices = @transform_3, window_bounds = array<i64: 8, 16>}, {pipeline_mode = #tpu.pipeline_mode<synchronous>, transform_indices = @transform_4, window_bounds = array<i64: 16, 8>}, {pipeline_mode = #tpu.pipeline_mode<synchronous>, transform_indices = @transform_5, window_bounds = array<i64: 16, 1>}, {pipeline_mode = #tpu.pipeline_mode<synchronous>, transform_indices = @transform_6, window_bounds = array<i64: 8, 16>}, {pipeline_mode = #tpu.pipeline_mode<synchronous>, transform_indices = @transform_7, window_bounds = array<i64: 1, 8>}, {transform_indices = @transform_8, window_bounds = array<i64: 1, 1>}, {transform_indices = @transform_9, window_bounds = array<i64: 1, 128>}]} {
    %c0 = arith.constant 0 : index
    %c0_0 = arith.constant 0 : index
    %0 = vector.load %arg1[%c0, %c0_0] : memref<8x128xf32, #tpu.memory_space<vmem>>, vector<8x128xf32>
    %c0_1 = arith.constant 0 : index
    %c0_2 = arith.constant 0 : index
    %1 = vector.load %arg2[%c0_1, %c0_2] : memref<16x8xf32, #tpu.memory_space<vmem>>, vector<16x8xf32>
    %cst = arith.constant dense<0.000000e+00> : vector<16x128xf32>
    %2 = tpu.matmul %1, %0, %cst {dimension_numbers = #tpu.dot_dimension_numbers<[1], [0], [0], [1], [0, 0, 1, 1], [], []>} : vector<16x8xf32>, vector<8x128xf32>, vector<16x128xf32> -> vector<16x128xf32>
    %c0_3 = arith.constant 0 : index
    %c0_4 = arith.constant 0 : index
    %3 = vector.load %arg3[%c0_3, %c0_4] : memref<16x1xf32, #tpu.memory_space<vmem>>, vector<16x1xf32>
    %4 = vector.broadcast %3 : vector<16x1xf32> to vector<16x128xf32>
    %5 = arith.addf %2, %4 : vector<16x128xf32>
    %c0_5 = arith.constant 0 : index
    %c0_6 = arith.constant 0 : index
    %6 = vector.load %arg4[%c0_5, %c0_6] : memref<8x16xf32, #tpu.memory_space<vmem>>, vector<8x16xf32>
    %cst_7 = arith.constant 0.000000e+00 : f32
    %7 = vector.broadcast %cst_7 : f32 to vector<16x128xf32>
    %8 = arith.cmpf ogt, %5, %7 : vector<16x128xf32>
    %cst_8 = arith.constant 1.000000e-01 : f32
    %9 = vector.broadcast %cst_8 : f32 to vector<16x128xf32>
    %10 = arith.mulf %9, %5 : vector<16x128xf32>
    %11 = arith.select %8, %5, %10 : vector<16x128xi1>, vector<16x128xf32>
    %cst_9 = arith.constant dense<0.000000e+00> : vector<8x128xf32>
    %12 = tpu.matmul %6, %11, %cst_9 {dimension_numbers = #tpu.dot_dimension_numbers<[1], [0], [0], [1], [0, 0, 1, 1], [], []>} : vector<8x16xf32>, vector<16x128xf32>, vector<8x128xf32> -> vector<8x128xf32>
    %c0_10 = arith.constant 0 : index
    %c0_11 = arith.constant 0 : index
    %13 = vector.load %arg5[%c0_10, %c0_11] : memref<16x8xf32, #tpu.memory_space<vmem>>, vector<16x8xf32>
    %cst_12 = arith.constant dense<0.000000e+00> : vector<16x128xf32>
    %14 = tpu.matmul %13, %12, %cst_12 {dimension_numbers = #tpu.dot_dimension_numbers<[1], [0], [0], [1], [0, 0, 1, 1], [], []>} : vector<16x8xf32>, vector<8x128xf32>, vector<16x128xf32> -> vector<16x128xf32>
    %c0_13 = arith.constant 0 : index
    %c0_14 = arith.constant 0 : index
    %15 = vector.load %arg6[%c0_13, %c0_14] : memref<16x1xf32, #tpu.memory_space<vmem>>, vector<16x1xf32>
    %16 = vector.broadcast %15 : vector<16x1xf32> to vector<16x128xf32>
    %17 = arith.addf %14, %16 : vector<16x128xf32>
    %c0_15 = arith.constant 0 : index
    %c0_16 = arith.constant 0 : index
    %18 = vector.load %arg7[%c0_15, %c0_16] : memref<8x16xf32, #tpu.memory_space<vmem>>, vector<8x16xf32>
    %cst_17 = arith.constant 0.000000e+00 : f32
    %19 = vector.broadcast %cst_17 : f32 to vector<16x128xf32>
    %20 = arith.cmpf ogt, %17, %19 : vector<16x128xf32>
    %cst_18 = arith.constant 1.000000e-01 : f32
    %21 = vector.broadcast %cst_18 : f32 to vector<16x128xf32>
    %22 = arith.mulf %21, %17 : vector<16x128xf32>
    %23 = arith.select %20, %17, %22 : vector<16x128xi1>, vector<16x128xf32>
    %cst_19 = arith.constant dense<0.000000e+00> : vector<8x128xf32>
    %24 = tpu.matmul %18, %23, %cst_19 {dimension_numbers = #tpu.dot_dimension_numbers<[1], [0], [0], [1], [0, 0, 1, 1], [], []>} : vector<8x16xf32>, vector<16x128xf32>, vector<8x128xf32> -> vector<8x128xf32>
    %c0_20 = arith.constant 0 : index
    %c0_21 = arith.constant 0 : index
    %25 = vector.load %arg8[%c0_20, %c0_21] : memref<1x8xf32, #tpu.memory_space<vmem>>, vector<1x8xf32>
    %cst_22 = arith.constant dense<0.000000e+00> : vector<1x128xf32>
    %26 = tpu.matmul %25, %24, %cst_22 {dimension_numbers = #tpu.dot_dimension_numbers<[1], [0], [0], [1], [0, 0, 1, 1], [], []>} : vector<1x8xf32>, vector<8x128xf32>, vector<1x128xf32> -> vector<1x128xf32>
    %c0_23 = arith.constant 0 : index
    %c0_24 = arith.constant 0 : index
    %27 = memref.load %arg9[%c0_23, %c0_24] : memref<1x1xf32, #tpu.memory_space<smem>>
    %28 = vector.broadcast %27 : f32 to vector<1x128xf32>
    %29 = arith.addf %26, %28 : vector<1x128xf32>
    %c0_25 = arith.constant 0 : index
    %c0_26 = arith.constant 0 : index
    %30 = vector.load %arg10[%c0_25, %c0_26] : memref<1x128xf32, #tpu.memory_space<vmem>>, vector<1x128xf32>
    tpu.vector_store %arg10[%c0_25, %c0_26], %29 {strides = array<i32>} : memref<1x128xf32, #tpu.memory_space<vmem>>, vector<1x128xf32>,
    return
  }
  func.func @transform_0(%arg0: i32) -> (i32, i32) {
    %c0_i32 = arith.constant 0 : i32
    %c0_i32_0 = arith.constant 0 : i32
    return %c0_i32, %arg0 : i32, i32
  }
  func.func @transform_1(%arg0: i32) -> (i32, i32) {
    %c0_i32 = arith.constant 0 : i32
    %c0_i32_0 = arith.constant 0 : i32
    %c0_i32_1 = arith.constant 0 : i32
    return %c0_i32, %c0_i32_0 : i32, i32
  }
  func.func @transform_2(%arg0: i32) -> (i32, i32) {
    %c0_i32 = arith.constant 0 : i32
    %c0_i32_0 = arith.constant 0 : i32
    %c0_i32_1 = arith.constant 0 : i32
    return %c0_i32, %c0_i32_0 : i32, i32
  }
  func.func @transform_3(%arg0: i32) -> (i32, i32) {
    %c0_i32 = arith.constant 0 : i32
    %c0_i32_0 = arith.constant 0 : i32
    %c0_i32_1 = arith.constant 0 : i32
    return %c0_i32, %c0_i32_0 : i32, i32
  }
  func.func @transform_4(%arg0: i32) -> (i32, i32) {
    %c0_i32 = arith.constant 0 : i32
    %c0_i32_0 = arith.constant 0 : i32
    %c0_i32_1 = arith.constant 0 : i32
    return %c0_i32, %c0_i32_0 : i32, i32
  }
  func.func @transform_5(%arg0: i32) -> (i32, i32) {
    %c0_i32 = arith.constant 0 : i32
    %c0_i32_0 = arith.constant 0 : i32
    %c0_i32_1 = arith.constant 0 : i32
    return %c0_i32, %c0_i32_0 : i32, i32
  }
  func.func @transform_6(%arg0: i32) -> (i32, i32) {
    %c0_i32 = arith.constant 0 : i32
    %c0_i32_0 = arith.constant 0 : i32
    %c0_i32_1 = arith.constant 0 : i32
    return %c0_i32, %c0_i32_0 : i32, i32
  }
  func.func @transform_7(%arg0: i32) -> (i32, i32) {
    %c0_i32 = arith.constant 0 : i32
    %c0_i32_0 = arith.constant 0 : i32
    %c0_i32_1 = arith.constant 0 : i32
    return %c0_i32, %c0_i32_0 : i32, i32
  }
  func.func @transform_8(%arg0: i32) -> (i32, i32) {
    %c0_i32 = arith.constant 0 : i32
    %c0_i32_0 = arith.constant 0 : i32
    %c0_i32_1 = arith.constant 0 : i32
    return %c0_i32, %c0_i32_0 : i32, i32
  }
  func.func @transform_9(%arg0: i32) -> (i32, i32) {
    %c0_i32 = arith.constant 0 : i32
    %c0_i32_0 = arith.constant 0 : i32
    return %c0_i32, %arg0 : i32, i32
  }
}

</mosaic_0001>

<bundles_post_ra>
// kernel: tpu_custom_call.1
= control target key start
LH: loop header
LB: loop body
LE: loop exit
PB: predicated region body
PF: predicated region fallthrough
CT: control target
= control target key end

     0   :  { %vm49_vm0 = vcmask 64512   ;;  %s681_s0 = inlined_call_operand.vmem [shape: f32[8,128], index: 0, kind: input, shape index: {}]   ;;  %s682_s1 = inlined_call_operand.vmem [shape: f32[16,8], index: 1, kind: input, shape index: {}]   ;;  %s683_s2 = inlined_call_operand.vmem [shape: f32[16,1], index: 2, kind: input, shape index: {}]   ;;  %s684_s3 = inlined_call_operand.vmem [shape: f32[8,16], index: 3, kind: input, shape index: {}]   ;;  %s685_s4 = inlined_call_operand.vmem [shape: f32[16,8], index: 4, kind: input, shape index: {}]   ;;  %s686_s5 = inlined_call_operand.vmem [shape: f32[16,1], index: 5, kind: input, shape index: {}]   ;;  %s687_s6 = inlined_call_operand.vmem [shape: f32[8,16], index: 6, kind: input, shape index: {}]   ;;  %s688_s7 = inlined_call_operand.vmem [shape: f32[1,8], index: 7, kind: input, shape index: {}]   ;;  %s689_s8 = inlined_call_operand.<no memory space> [shape: f32[1,1], index: 8, kind: input, shape index: {}]   ;;  %s690_s9 = inlined_call_operand.hbm [shape: f32[1,128], index: 9, kind: output, shape index: {}]  }
   0x1   :  { %v34_v0 = vld [vmem:[%s681_s0] sm:$0xff]  ;;  %v36_v2 = vld [vmem:[%s682_s1 + $0x8] sm:$0xff] }
   0x2   :  { %v35_v1 = vld [vmem:[%s682_s1] sm:$0xff]  ;;  %499 = vmatprep.subr.mxu0 %v34_v0 }
   0x3   :  { %501 = vmatprep.mubr.msk.f32.mxu0 %vm49_vm0, %v35_v1  ;;  %v37_v3 = vld [vmem:[%s683_s2] sm:$0xff] }
   0x4   :  { %15 = vsyncpa [#allocation4], 0  ;;  %500 = vmatpush3.msra.mxu0 %v34_v0  ;;  %v565_v4 = vmov 0   ;;  %v38_v5 = vld [vmem:[%s683_s2 + $0x8] sm:$0xff]  ;;  %v566_v6 = vmov 0.0|0.0   ;;  %vm567_vm1 = vmmov 0   ;;  %v389_v41 = vstv %s689_s8 }
   0x5   :  { %539 = vset.pattern.permute.xlu0 %v565_v4  ;;  %502 = vmatmul.mubr.msk.f32.vlgmr.msra.gmra.mrb[0].mxu0 %vm49_vm0, %v36_v2  ;;  %v568_v7 = vmov 0.0   ;;  %v131_v19 = vld [vmem:[%s684_s3] sm:$0xff]  ;;  %vm138_vm4 = vcmask 130048   ;;  %v215_v22 = vld [vmem:[%s686_s5 + $0x8] sm:$0xff]  ;;  %s569_s29 = smov [#allocation3]  }
   0x6   :  { %41 = vperm.xlu0 %539, %v37_v3   ;;  %540 = vset.pattern.permute.xlu1 %v565_v4  ;;  %v212_v20 = vld [vmem:[%s685_s4] sm:$0xff]  ;;  %v213_v24 = vld [vmem:[%s685_s4 + $0x8] sm:$0xff]  ;;  %s470_s30 = sshll.u32 %s569_s29, 4  ;;  %s471_s30 = int_to_ptr.vmem [resolvable:$true] %s470_s30 }
   0x7   :  { %528 = vmatprep.subr.bf16.mxu1 %v566_v6  ;;  %508 = vmatprep.mubr.msk.f32.mxu1 %vm567_vm1, %v568_v7  ;;  %v214_v21 = vld [vmem:[%s686_s5] sm:$0xff]  ;;  %s545_s10 = scalar_lea.vmem %s471_s30, 32  ;;  %p546_p1 = scmp.lt.s32.totalorder %s471_s30, %s471_s30 }
   0x8   :  { %513 = vmatprep.mubr.msk.f32.mxu0 %vm49_vm0, %v212_v20  ;;  %218 = vperm.xlu1 %540, %v214_v21   ;;  %v307_v37 = vld [vmem:[%s687_s6] sm:$0xff]  ;;  %s541_s6 = scalar_lea.vmem %s471_s30, 16 }
   0x9   :  { %v387_v38 = vld [vmem:[%s688_s7] sm:$0x1]  ;;  %p542_p0 = scmp.ne.s32.totalorder %s471_s30, %s541_s6  ;;  %p547_p2 = scmp.lt.s32.totalorder %s545_s10, %s541_s6 }
   0xa   :  { %46 = vperm.xlu0 %539, %v38_v5  }
   0xb   :  { %p548_p3 = por %p547_p2, %p546_p1 }
   0xc   :  { %223 = vperm.xlu1 %540, %v215_v22  }
   0xd   :  { %p549_p4 = pnand %p548_p3, %p542_p0 }
  0x85   :  { %v42_v8 = vpop.permute.xlu0 %41 }
  0x87   :  { %v219_v26 = vpop.permute.xlu1 %218 }
  0x89   :  { %v47_v9 = vpop.permute.xlu0 %46 }
  0x8b   :  { %v224_v27 = vpop.permute.xlu1 %223 }
  0xd8   :  { %v503_v10 = vpop.f32.mrb[0].mxu0 }
  0xd9   :  { %v128_v11 = vadd.f32 %v503_v10, %v47_v9  ;;  %v122_v12 = vpop.f32.mrb[1].mxu0 }
  0xda   :  { %v123_v13 = vadd.f32 %v122_v12, %v42_v8 }
  0xdb   :  { %v135_v14 = vmul.f32 0.1, %v128_v11  ;;  %vm133_vm2 = vcmp.gt.f32.partialorder %v128_v11, 0.0 }
  0xdc   :  { %v134_v15 = vmul.f32 0.1, %v123_v13  ;;  %vm132_vm3 = vcmp.gt.f32.partialorder %v123_v13, 0.0 }
  0xdd   :  { %v137_v16 = vsel %vm133_vm2, %v128_v11, %v135_v14 }
  0xde   :  { %v136_v17 = vsel %vm132_vm3, %v123_v13, %v134_v15 }
  0xdf   :  { %v529_v18 = vpack.c.bf16 %v137_v16, %v136_v17 }
  0xe1   :  { %530 = vmatpush3.bf16.msra.mxu1 %v529_v18 }
  0xe2   :  { %531 = vmatprep.subr.bf16.mxu1 %v566_v6 }
  0xe4   :  { %509 = vmatmul.mubr.msk.f32.vlgmr.msra.gmra.mrb[0].mxu1 %vm138_vm4, %v131_v19 }
  0xe5   :  { %520 = vmatprep.mubr.msk.f32.mxu1 %vm567_vm1, %v568_v7 }
 0x1b7   :  { %v208_v23 = vpop.f32.mrb[0].mxu1 }
 0x1b8   :  { %v510_v25 = vpop.f32.mrb[1].mxu1  ;;  %511 = vmatprep.subr.mxu0 %v208_v23 }
 0x1b9   :  { %512 = vmatpush3.msra.mxu0 %v208_v23 }
 0x1ba   :  { %514 = vmatmul.mubr.msk.f32.vlgmr.msra.gmra.mrb[2].mxu0 %vm49_vm0, %v213_v24  ;;  %523 = vmatprep.subr.mxu0 %v568_v7 }
 0x1bb   :  { %525 = vmatprep.mubr.msk.f32.mxu0 %vm567_vm1, %v568_v7 }
 0x28d   :  { %v515_v28 = vpop.f32.mrb[2].mxu0 }
 0x28e   :  { %v304_v29 = vadd.f32 %v515_v28, %v224_v27  ;;  %v298_v30 = vpop.f32.mrb[3].mxu0 }
 0x28f   :  { %v299_v31 = vadd.f32 %v298_v30, %v219_v26 }
 0x290   :  { %vm309_vm5 = vcmp.gt.f32.partialorder %v304_v29, 0.0  ;;  %v311_v32 = vmul.f32 0.1, %v304_v29 }
 0x291   :  { %vm308_vm6 = vcmp.gt.f32.partialorder %v299_v31, 0.0  ;;  %v310_v33 = vmul.f32 0.1, %v299_v31 }
 0x292   :  { %v313_v34 = vsel %vm309_vm5, %v304_v29, %v311_v32 }
 0x293   :  { %v312_v35 = vsel %vm308_vm6, %v299_v31, %v310_v33 }
 0x294   :  { %v532_v36 = vpack.c.bf16 %v313_v34, %v312_v35 }
 0x296   :  { %533 = vmatpush3.bf16.msra.mxu1 %v532_v36 }
 0x299   :  { %521 = vmatmul.mubr.msk.f32.vlgmr.msra.gmra.mrb[2].mxu1 %vm138_vm4, %v307_v37 }
 0x36c   :  { %v383_v39 = vpop.f32.mrb[2].mxu1 }
 0x36d   :  { %v522_v40 = vpop.f32.mrb[3].mxu1  ;;  %524 = vmatpush3.msra.mxu0 %v383_v39 }
 0x36e   :  { %526 = vmatmul.mubr.msk.f32.vlgmr.msra.gmra.mrb[4].mxu0 %vm49_vm0, %v387_v38 }
 0x441   :  { %v459_v42 = vpop.f32.mrb[4].mxu0 }
 0x442   :  { %v460_v43 = vadd.f32 %v459_v42, %v389_v41  ;;  %v527_v44 = vpop.f32.mrb[5].mxu0 }
 0x444   :  { %463 = vst [vmem:[#allocation3] sm:$0x1] %v460_v43 }
 0x445   :  { %552 = shalt.err (!%p549_p4)
}
 0x446   :  { %s553_s12 = scalar_lea.hbm %s690_s9, 16 }
 0x447   :  { %p554_p5 = scmp.ne.s32.totalorder %s690_s9, %s553_s12  ;;  %p557_p6 = scmp.lt.u32.totalorder %s553_s12, %s690_s9 }
 0x449   :  { %p559_p7 = pnand %p557_p6, %p554_p5 }
 0x44b   :  { %562 = shalt.err (!%p559_p7)
}
 0x44c   :  { %473 = dma.vmem_to_hbm [thread:$0]  %s471_s30, 16, %s690_s9, [#allocation4]  }
 0x44d   :  { %563 = dma.done.wait [#allocation4], 16  }
 0x44e   :  { %564 = vsyncadd [#allocation4], 4294967280 }
 0x44f   :  { %477 = vsyncpa [#allocation4], 1 }

</bundles_post_ra>
